<compile_context>
chip_gen: v7x
topology: tpu7x:2x2x1
jax: 0.10.0
libtpu: 0.0.40
codegen_flags: <defaults>
</compile_context>

<pallas_src>
import math

import jax
import jax.numpy as jnp
import numpy as np
from jax.experimental import pallas as pl
from jax.experimental.pallas import tpu as pltpu

_LANE = 128                              # vreg lane width
_SUBLANE = 8                             # f32 sublane count
_TARGET_BLOCK_BYTES = 2 * 1024 * 1024    # ~512-row-class blocks -> ~85% of HBM roofline
_VMEM_LIMIT_BYTES = 32 * 1024 * 1024     # 3 streams x 2 buffers x 2 MiB << 32 MiB


def _compiler_params():
    return pltpu.CompilerParams(
        dimension_semantics=("parallel",),
        vmem_limit_bytes=_VMEM_LIMIT_BYTES,
    )


def _choose_tile_rows(total_rows: int, row_bytes: int,
                      target_block_bytes: int = _TARGET_BLOCK_BYTES) -> int:
    """Largest row tile (multiple of 8) keeping a block near target_block_bytes,
    while leaving >= 2 grid steps when possible (v7x megacore)."""
    if total_rows <= _SUBLANE:
        return total_rows                               # full-dim block, single step
    rows = (target_block_bytes // max(row_bytes, 1)) // _SUBLANE * _SUBLANE
    rows = max(_SUBLANE, rows)
    padded = pl.cdiv(total_rows, _SUBLANE) * _SUBLANE
    rows = min(rows, padded)
    if rows >= padded and padded >= 2 * _SUBLANE:       # don't collapse to a 1-step grid
        rows = max(_SUBLANE, (padded // 2) // _SUBLANE * _SUBLANE)
    return rows


# ---------------------------------------------------------------------------
# Kernels
# ---------------------------------------------------------------------------
def _add_pe_3d_kernel(x_ref, pe_ref, o_ref):
    # x_ref: (tile_s, B, D)  pe_ref: (tile_s, D)  o_ref: (tile_s, B, D)
    o_ref[...] = (x_ref[...] + pe_ref[...][:, None, :]).astype(o_ref.dtype)


def _add_2d_kernel(x_ref, pe_ref, o_ref):
    # Lane-dense elementwise add: last dim is a multiple of 128 -> unmasked vst.
    o_ref[...] = (x_ref[...] + pe_ref[...]).astype(o_ref.dtype)


# ---------------------------------------------------------------------------
# PE table (same math as the PyTorch __init__)
# ---------------------------------------------------------------------------
def make_pe_table(d_model: int, max_len: int, dtype=jnp.float32) -> jax.Array:
    assert d_model % 2 == 0, "d_model must be even (same assumption as the PyTorch module)"
    position = np.arange(max_len, dtype=np.float32)[:, None]                 # (max_len, 1)
    div_term = np.exp(np.arange(0, d_model, 2, dtype=np.float32)
                      * (-math.log(10000.0) / d_model))                      # (d_model/2,)
    pe = np.zeros((max_len, d_model), dtype=np.float32)
    pe[:, 0::2] = np.sin(position * div_term)
    pe[:, 1::2] = np.cos(position * div_term)
    return jnp.asarray(pe, dtype=dtype)


# ---------------------------------------------------------------------------
# pallas_call wrappers
# ---------------------------------------------------------------------------
def _add_pe_3d(x: jax.Array, pe: jax.Array) -> jax.Array:
    """Natural layout: x (S,B,D) + pe block (tile_s,D) broadcast over batch."""
    S, B, D = x.shape
    itemsize = jnp.dtype(x.dtype).itemsize
    tile_s = _choose_tile_rows(S, B * D * itemsize)
    pe_in = pe
    if tile_s % _SUBLANE != 0:     # S < 8: make the PE block equal its full dims
        pe_in = pe[:S]
    grid = (pl.cdiv(S, tile_s),)
    cost = pl.CostEstimate(flops=S * B * D, transcendentals=0,
                           bytes_accessed=(2 * S * B * D + S * D) * itemsize)
    return pl.pallas_call(
        _add_pe_3d_kernel,
        out_shape=jax.ShapeDtypeStruct((S, B, D), x.dtype),
        grid_spec=pl.GridSpec(
            grid=grid,
            in_specs=[pl.BlockSpec((tile_s, B, D), lambda i: (i, 0, 0)),
                      pl.BlockSpec((tile_s, D), lambda i: (i, 0))],
            out_specs=pl.BlockSpec((tile_s, B, D), lambda i: (i, 0, 0)),
        ),
        compiler_params=_compiler_params(),
        cost_estimate=cost,
    )(x, pe_in)   # full PE table: no host-side slice, index_map picks the needed rows


def _add_2d(x_flat: jax.Array, pe_flat: jax.Array) -> jax.Array:
    """Lane-dense elementwise add of two equal-shaped 2D arrays (C % 128 == 0)."""
    R, C = x_flat.shape
    itemsize = jnp.dtype(x_flat.dtype).itemsize
    tile_r = _choose_tile_rows(R, C * itemsize)
    grid = (pl.cdiv(R, tile_r),)
    cost = pl.CostEstimate(flops=R * C, transcendentals=0,
                           bytes_accessed=3 * R * C * itemsize)
    return pl.pallas_call(
        _add_2d_kernel,
        out_shape=jax.ShapeDtypeStruct((R, C), x_flat.dtype),
        grid_spec=pl.GridSpec(
            grid=grid,
            in_specs=[pl.BlockSpec((tile_r, C), lambda i: (i, 0)),
                      pl.BlockSpec((tile_r, C), lambda i: (i, 0))],
            out_specs=pl.BlockSpec((tile_r, C), lambda i: (i, 0)),
        ),
        compiler_params=_compiler_params(),
        cost_estimate=cost,
    )(x_flat, pe_flat)


def positional_encoding(x: jax.Array, pe: jax.Array) -> jax.Array:
    """x: [seq_len, batch, d_model]; pe: [max_len, d_model]. Returns x + pe[:S].

    Eval-mode forward of the PyTorch PositionalEncoding (dropout == identity).
    """
    S, B, D = x.shape
    assert pe.ndim == 2 and pe.shape[1] == D and pe.shape[0] >= S
    pe = pe.astype(x.dtype)

    if D % _LANE == 0:
        # Production layout (d_model multiple of 128): already lane-dense;
        # keep 3D blocks and broadcast the small PE block over batch in-kernel.
        return _add_pe_3d(x, pe)

    # Small / odd d_model: build a lane-dense 2D view so stores are full-width vst.
    x2 = x.reshape(S, B * D)
    pe_b = jnp.tile(pe[:S], (1, B))                 # pe_b[s, b*D + d] == pe[s, d]
    if (B * D) % _LANE == 0:
        out2 = _add_2d(x2, pe_b)
    elif (S * B * D) % _LANE == 0:
        rows = (S * B * D) // _LANE
        out2 = _add_2d(x2.reshape(rows, _LANE),
                       pe_b.reshape(rows, _LANE)).reshape(S, B * D)
    else:
        # No lane-dense 2D view exists; fall back to the (masked-store) 3D path.
        return _add_pe_3d(x, pe)
    return out2.reshape(S, B, D)


if __name__ == "__main__":
    # Path A: small demo shapes from the module (exercises the lane-dense 2D path).
    seq_len, batch, d_model, max_len = 8, 2, 32, 64
    key = jax.random.PRNGKey(0)
    x = jax.random.normal(key, (seq_len, batch, d_model), dtype=jnp.float32)
    pe = make_pe_table(d_model, max_len)
    out = jax.block_until_ready(positional_encoding(x, pe))
    ref = x + pe[:seq_len][:, None, :]
    np.testing.assert_allclose(np.asarray(out), np.asarray(ref), rtol=1e-6, atol=1e-6)

    # Path B: production layout (d_model % 128 == 0), multi-step "parallel" grid.
    seq_len2, batch2, d_model2, max_len2 = 16, 2, 128, 32
    x2 = jax.random.normal(jax.random.PRNGKey(0), (seq_len2, batch2, d_model2),
                           dtype=jnp.float32)
    pe2 = make_pe_table(d_model2, max_len2)
    out2 = jax.block_until_ready(positional_encoding(x2, pe2))
    ref2 = x2 + pe2[:seq_len2][:, None, :]
    np.testing.assert_allclose(np.asarray(out2), np.asarray(ref2), rtol=1e-6, atol=1e-6)

    print("KERNEL_OK")
</pallas_src>

<mosaic_0001>
module attributes {stable_mosaic.version = 11 : i64} {
  func.func @_add_2d_kernel(%arg0: i32, %arg1: memref<4x128xf32, #tpu.memory_space<vmem>>, %arg2: memref<4x128xf32, #tpu.memory_space<vmem>>, %arg3: memref<4x128xf32, #tpu.memory_space<vmem>>) attributes {dimension_semantics = [#tpu.dimension_semantics<parallel>], iteration_bounds = array<i64: 1>, scalar_prefetch = 0 : i64, scratch_operands = 0 : i64, tpu.core_type = #tpu.core_type<tc>, window_params = [{transform_indices = @transform_0, window_bounds = array<i64: 4, 128>}, {transform_indices = @transform_1, window_bounds = array<i64: 4, 128>}, {transform_indices = @transform_2, window_bounds = array<i64: 4, 128>}]} {
    %c0 = arith.constant 0 : index
    %c0_0 = arith.constant 0 : index
    %0 = vector.load %arg1[%c0, %c0_0] : memref<4x128xf32, #tpu.memory_space<vmem>>, vector<4x128xf32>
    %c0_1 = arith.constant 0 : index
    %c0_2 = arith.constant 0 : index
    %1 = vector.load %arg2[%c0_1, %c0_2] : memref<4x128xf32, #tpu.memory_space<vmem>>, vector<4x128xf32>
    %2 = arith.addf %0, %1 : vector<4x128xf32>
    %c0_3 = arith.constant 0 : index
    %c0_4 = arith.constant 0 : index
    %3 = vector.load %arg3[%c0_3, %c0_4] : memref<4x128xf32, #tpu.memory_space<vmem>>, vector<4x128xf32>
    tpu.vector_store %arg3[%c0_3, %c0_4], %2 {strides = array<i32>} : memref<4x128xf32, #tpu.memory_space<vmem>>, vector<4x128xf32>,
    return
  }
  func.func @transform_0(%arg0: i32) -> (i32, i32) {
    %c0_i32 = arith.constant 0 : i32
    %c0_i32_0 = arith.constant 0 : i32
    return %arg0, %c0_i32 : i32, i32
  }
  func.func @transform_1(%arg0: i32) -> (i32, i32) {
    %c0_i32 = arith.constant 0 : i32
    %c0_i32_0 = arith.constant 0 : i32
    return %arg0, %c0_i32 : i32, i32
  }
  func.func @transform_2(%arg0: i32) -> (i32, i32) {
    %c0_i32 = arith.constant 0 : i32
    %c0_i32_0 = arith.constant 0 : i32
    return %arg0, %c0_i32 : i32, i32
  }
}

</mosaic_0001>

<bundles_post_ra>
// kernel: tpu_custom_call.1
= control target key start
LH: loop header
LB: loop body
LE: loop exit
PB: predicated region body
PF: predicated region fallthrough
CT: control target
= control target key end

     0   :  { %7 = vsyncpa [#allocation3], 0  ;;  %s185_s0 = inlined_call_operand.hbm [shape: f32[4,128], index: 0, kind: input, shape index: {}]   ;;  %s186_s1 = inlined_call_operand.hbm [shape: f32[4,128], index: 1, kind: input, shape index: {}]   ;;  %s187_s2 = inlined_call_operand.hbm [shape: f32[4,128], index: 2, kind: output, shape index: {}]  }
   0x1   :  { %8 = vsyncpa [#allocation6], 0 }
   0x2   :  { %9 = vsyncpa [#allocation4], 0  ;;  %s131_s9 = smov [#allocation2]   ;;  %s132_s11 = smov [#allocation5]  }
   0x3   :  { %s16_s10 = sshll.u32 %s131_s9, 4  ;;  %s26_s12 = sshll.u32 %s132_s11, 4  ;;  %s17_s10 = int_to_ptr.vmem [resolvable:$true] %s16_s10  ;;  %s27_s12 = int_to_ptr.vmem [resolvable:$true] %s26_s12 }
   0x4   :  { %s59_s15 = scalar_lea.hbm %s185_s0, 64 }
   0x5   :  { %p60_p0 = scmp.ne.s32.totalorder %s185_s0, %s59_s15  ;;  %p63_p1 = scmp.lt.u32.totalorder %s59_s15, %s185_s0 }
   0x7   :  { %p65_p2 = pnand %p63_p1, %p60_p0 }
   0x9   :  { %68 = shalt.err (!%p65_p2)
}
   0xa   :  { %s69_s20 = scalar_lea.vmem %s17_s10, 64  ;;  %p74_p4 = scmp.lt.s32.totalorder %s17_s10, %s17_s10 }
   0xb   :  { %p70_p3 = scmp.ne.s32.totalorder %s17_s10, %s69_s20  ;;  %p75_p5 = scmp.lt.s32.totalorder %s69_s20, %s69_s20 }
   0xd   :  { %p76_p6 = por %p75_p5, %p74_p4 }
   0xf   :  { %p77_p7 = pnand %p76_p6, %p70_p3 }
  0x11   :  { %80 = shalt.err (!%p77_p7)
}
  0x12   :  { %19 = dma.hbm_to_vmem [thread:$0]  %s185_s0, 64, %s17_s10, [#allocation3]  }
  0x13   :  { %s81_s25 = scalar_lea.hbm %s186_s1, 64 }
  0x14   :  { %p82_p8 = scmp.ne.s32.totalorder %s186_s1, %s81_s25  ;;  %p85_p9 = scmp.lt.u32.totalorder %s81_s25, %s186_s1 }
  0x16   :  { %p87_p10 = pnand %p85_p9, %p82_p8 }
  0x18   :  { %90 = shalt.err (!%p87_p10)
}
  0x19   :  { %s91_s30 = scalar_lea.vmem %s27_s12, 64  ;;  %p96_p12 = scmp.lt.s32.totalorder %s27_s12, %s27_s12 }
  0x1a   :  { %p92_p11 = scmp.ne.s32.totalorder %s27_s12, %s91_s30  ;;  %p97_p13 = scmp.lt.s32.totalorder %s91_s30, %s91_s30 }
  0x1c   :  { %p98_p0 = por %p97_p13, %p96_p12 }
  0x1e   :  { %p99_p1 = pnand %p98_p0, %p92_p11 }
  0x20   :  { %102 = shalt.err (!%p99_p1)
}
  0x21   :  { %29 = dma.hbm_to_vmem [thread:$0]  %s186_s1, 64, %s27_s12, [#allocation6]  }
  0x22   :  { %125 = dma.done.wait [#allocation3], 64  }
  0x23   :  { %126 = vsyncadd [#allocation3], 4294967232 }
  0x24   :  { %127 = dma.done.wait [#allocation6], 64  }
  0x25   :  { %128 = vsyncadd [#allocation6], 4294967232  ;;  %s133_s4 = smov [#allocation7]   ;;  %v36_v0 = vld [vmem:[#allocation2] sm:$0xf] }
  0x26   :  { %s46_s5 = sshll.u32 %s133_s4, 4  ;;  %v37_v1 = vld [vmem:[#allocation5] sm:$0xf]  ;;  %s47_s5 = int_to_ptr.vmem [resolvable:$true] %s46_s5 }
  0x27   :  { %v38_v2 = vadd.f32 %v37_v1, %v36_v0  ;;  %s103_s6 = scalar_lea.vmem %s47_s5, 64  ;;  %p108_p3 = scmp.lt.s32.totalorder %s47_s5, %s47_s5 }
  0x28   :  { %p104_p2 = scmp.ne.s32.totalorder %s47_s5, %s103_s6  ;;  %p109_p4 = scmp.lt.s32.totalorder %s103_s6, %s103_s6 }
  0x29   :  { %39 = vst [vmem:[#allocation7] sm:$0xf] %v38_v2 }
  0x2a   :  { %p110_p5 = por %p109_p4, %p108_p3 }
  0x2c   :  { %p111_p6 = pnand %p110_p5, %p104_p2 }
  0x2e   :  { %114 = shalt.err (!%p111_p6)
}
  0x2f   :  { %s115_s8 = scalar_lea.hbm %s187_s2, 64 }
  0x30   :  { %p116_p7 = scmp.ne.s32.totalorder %s187_s2, %s115_s8  ;;  %p119_p8 = scmp.lt.u32.totalorder %s115_s8, %s187_s2 }
  0x32   :  { %p121_p9 = pnand %p119_p8, %p116_p7 }
  0x34   :  { %124 = shalt.err (!%p121_p9)
}
  0x35   :  { %49 = dma.vmem_to_hbm [thread:$0]  %s47_s5, 64, %s187_s2, [#allocation4]  }
  0x36   :  { %129 = dma.done.wait [#allocation4], 64  }
  0x37   :  { %130 = vsyncadd [#allocation4], 4294967232 }
  0x38   :  { %53 = vsyncpa [#allocation3], 1 }
  0x39   :  { %54 = vsyncpa [#allocation6], 1 }
  0x3a   :  { %55 = vsyncpa [#allocation4], 1 }

</bundles_post_ra>
